<compile_context>
chip_gen: v7x
topology: tpu7x:2x2x1
jax: 0.10.0
libtpu: 0.0.40
codegen_flags: <defaults>
</compile_context>

<pallas_src>
import functools
import math

import jax
import jax.numpy as jnp
from jax.experimental import pallas as pl
from jax.experimental.pallas import tpu as pltpu

LANES = 128
_DEFAULT_MAX_TILE_ROWS = 4096   # 4096 x 128 f32 = 8 MiB/step, 16 MiB double-buffered
_DEFAULT_CORE_SPLITS = 2        # v7x has 2 TensorCores; a serial no-op split on v5e/v6e


def _cdiv(a: int, b: int) -> int:
    return -(-a // b)


def _round_up(x: int, m: int) -> int:
    return _cdiv(x, m) * m


def piven_kernel(n_ref, o_ref, y_ref, w_ref, kh_ref, ks_ref, se_ref, *, soft):
    """n_ref : SMEM (1,) int32 true batch size (scalar prefetch).
       o_ref : (3, tile_rows, 128) rows = [U, L, v].
       y_ref : (tile_rows, 128) targets.
       w/kh/ks/se_ref : (1, 8, 128) per-core-slice partial-sum outputs
                        (resident across the reduction axis)."""
    c = pl.program_id(0)
    t = pl.program_id(1)
    num_t = pl.num_programs(1)
    tile_rows = y_ref.shape[0]
    fold = tile_rows // 8
    tile_elems = tile_rows * LANES

    @pl.when(t == 0)
    def _init():
        w_ref[...] = jnp.zeros_like(w_ref)
        kh_ref[...] = jnp.zeros_like(kh_ref)
        ks_ref[...] = jnp.zeros_like(ks_ref)
        se_ref[...] = jnp.zeros_like(se_ref)

    U = o_ref[0].astype(jnp.float32)
    L = o_ref[1].astype(jnp.float32)
    v = o_ref[2].astype(jnp.float32)
    y = y_ref[...].astype(jnp.float32)

    # Heavy per-element math, shared by both (masked / unmasked) paths.
    width = jnp.abs(U - L)
    # Strict > matches clamp(sign(.),0)*clamp(sign(.),0) exactly (equality -> 0).
    k_hard = ((U > y) & (y > L)).astype(jnp.float32)
    k_soft = jax.nn.sigmoid(soft * (U - y)) * jax.nn.sigmoid(soft * (y - L))
    pe = v * U + (1.0 - v) * L
    sq_err = jnp.square(pe - y)

    def fold_sum(x):
        # (tile_rows, 128) -> (fold, 8, 128) -> sum over leading axis:
        # pure vreg adds (VALU), no cross-sublane XLU reduce per step.
        return jnp.sum(x.reshape(fold, 8, LANES), axis=0)

    # Number of still-valid elements at the start of this tile (scalar ALU).
    global_tile = c * num_t + t
    rem = n_ref[0] - global_tile * tile_elems
    has_pad = rem < tile_elems

    @pl.when(jnp.logical_not(has_pad))
    def _interior():  # fast path: tile is fully valid, no masking.
        w_ref[0] += fold_sum(width * k_hard)
        kh_ref[0] += fold_sum(k_hard)
        ks_ref[0] += fold_sum(k_soft)
        se_ref[0] += fold_sum(sq_err)

    @pl.when(has_pad)
    def _tail():      # boundary (or fully-padded) tile: mask padded lanes out.
        row = jax.lax.broadcasted_iota(jnp.int32, (tile_rows, LANES), 0)
        col = jax.lax.broadcasted_iota(jnp.int32, (tile_rows, LANES), 1)
        valid = (row * LANES + col) < rem
        k_hard_m = jnp.where(valid, k_hard, 0.0)
        w_ref[0] += fold_sum(width * k_hard_m)
        kh_ref[0] += fold_sum(k_hard_m)
        ks_ref[0] += fold_sum(jnp.where(valid, k_soft, 0.0))
        se_ref[0] += fold_sum(jnp.where(valid, sq_err, 0.0))


def piven_loss_pallas(outputs: jax.Array, targets: jax.Array, *,
                      lambda_: float = 15.0, soft: float = 160.0,
                      alpha: float = 0.05, beta: float = 0.5, eps: float = 1e-6,
                      max_tile_rows: int = _DEFAULT_MAX_TILE_ROWS,
                      num_core_splits: int = _DEFAULT_CORE_SPLITS) -> jax.Array:
    """outputs: (N, 3) [U, L, v]; targets: (N, 1) [y]. Returns scalar loss."""
    assert outputs.ndim == 2 and outputs.shape[1] == 3
    assert targets.ndim == 2 and targets.shape[1] == 1
    n = outputs.shape[0]
    if n == 0:
        raise ValueError("PIVEN loss is undefined for an empty batch (N == 0).")

    C = max(1, int(num_core_splits))
    total_rows = _cdiv(n, LANES)
    rows_per_split = _cdiv(total_rows, C)
    T = max(1, _cdiv(rows_per_split, max_tile_rows))
    tile_rows = _round_up(_cdiv(rows_per_split, T), 8)
    padded_rows = C * T * tile_rows
    n_pad = padded_rows * LANES

    # Wrapper glue: transpose + pad + reshape to a lane/sublane-dense layout.
    # allow_input_fusion below lets XLA fuse this into the pallas_call operands.
    o_t = outputs.T                 # (3, N)
    y_flat = targets[:, 0]          # (N,)
    if n_pad != n:
        o_t = jnp.pad(o_t, ((0, 0), (0, n_pad - n)))
        y_flat = jnp.pad(y_flat, (0, n_pad - n))
    o_3d = o_t.reshape(3, padded_rows, LANES)
    y_2d = y_flat.reshape(padded_rows, LANES)

    n_arr = jnp.array([n], dtype=jnp.int32)

    kernel = functools.partial(piven_kernel, soft=float(soft))

    part_shape = jax.ShapeDtypeStruct((C, 8, LANES), jnp.float32)
    part_spec = pl.BlockSpec((1, 8, LANES), lambda c, t, n_s: (c, 0, 0))

    grid_spec = pltpu.PrefetchScalarGridSpec(
        num_scalar_prefetch=1,
        grid=(C, T),
        in_specs=[
            pl.BlockSpec((3, tile_rows, LANES),
                         lambda c, t, n_s: (0, c * T + t, 0)),
            pl.BlockSpec((tile_rows, LANES),
                         lambda c, t, n_s: (c * T + t, 0)),
        ],
        out_specs=[part_spec, part_spec, part_spec, part_spec],
    )

    in_bytes = o_3d.size * o_3d.dtype.itemsize + y_2d.size * y_2d.dtype.itemsize
    w_p, kh_p, ks_p, se_p = pl.pallas_call(
        kernel,
        out_shape=(part_shape, part_shape, part_shape, part_shape),
        grid_spec=grid_spec,
        compiler_params=pltpu.CompilerParams(
            dimension_semantics=("parallel", "arbitrary"),
            vmem_limit_bytes=32 * 1024 * 1024,
            allow_input_fusion=[False, True, True],
        ),
        cost_estimate=pl.CostEstimate(
            flops=int(30 * n_pad),
            transcendentals=int(2 * n_pad),
            bytes_accessed=int(in_bytes + 4 * C * 8 * LANES * 4),
        ),
    )(n_arr, o_3d, y_2d)

    # Tiny scalar epilogue (combine per-core partials) in plain XLA.
    sum_w = jnp.sum(w_p)
    sum_kh = jnp.sum(kh_p)
    sum_ks = jnp.sum(ks_p)
    sum_se = jnp.sum(se_p)
    nf = jnp.float32(n)

    mpiw_capt = sum_w / (sum_kh + eps)
    picp_soft = sum_ks / nf
    penalty = jnp.square(jnp.maximum(1.0 - alpha - picp_soft, 0.0))
    interval_loss = mpiw_capt + math.sqrt(n) * lambda_ * penalty
    regloss = sum_se / nf
    return beta * interval_loss + (1.0 - beta) * regloss


def piven_loss_reference(outputs, targets, *, lambda_=15.0, soft=160.0,
                         alpha=0.05, beta=0.5, eps=1e-6):
    """Plain-JAX reference (also used as the small-batch fast path)."""
    U, L, v = outputs[:, 0], outputs[:, 1], outputs[:, 2]
    y = targets[:, 0]
    n = outputs.shape[0]
    k_soft = jax.nn.sigmoid(soft * (U - y)) * jax.nn.sigmoid(soft * (y - L))
    k_hard = jnp.maximum(jnp.sign(U - y), 0.0) * jnp.maximum(jnp.sign(y - L), 0.0)
    mpiw_capt = jnp.sum(jnp.abs(U - L) * k_hard) / (jnp.sum(k_hard) + eps)
    penalty = jnp.square(jnp.maximum(1.0 - alpha - jnp.mean(k_soft), 0.0))
    interval_loss = mpiw_capt + math.sqrt(n) * lambda_ * penalty
    pe = (v * U + (1.0 - v) * L).reshape(-1, 1)
    regloss = jnp.mean(jnp.square(pe - targets))
    return beta * interval_loss + (1.0 - beta) * regloss


def piven_loss(outputs, targets, *, min_pallas_batch: int = 65536, **kwargs):
    """Dispatcher: tiny batches fuse better as a single XLA fusion; large batches
    (HBM-bandwidth regime) use the Pallas kernel."""
    if outputs.shape[0] < min_pallas_batch:
        return piven_loss_reference(outputs, targets, **kwargs)
    return piven_loss_pallas(outputs, targets, **kwargs)


if __name__ == "__main__":
    def make_inputs(key, N):
        k1, k2, k3, k4 = jax.random.split(key, 4)
        y = jax.random.normal(k1, (N,), dtype=jnp.float32)
        center = y + 0.5 * jax.random.normal(k2, (N,), dtype=jnp.float32)
        width = jnp.abs(jax.random.normal(k3, (N,), dtype=jnp.float32)) + 0.1
        U = center + width
        L = center - width
        v = jax.nn.sigmoid(jax.random.normal(k4, (N,), dtype=jnp.float32))
        outputs = jnp.stack([U, L, v], axis=1)  # (N, 3)
        targets = y[:, None]                    # (N, 1)
        return outputs, targets

    key = jax.random.PRNGKey(0)
    k_a, k_b, k_c = jax.random.split(key, 3)

    # Test 1: small batch, tail masking + fully-padded second core slice (N=300).
    outs_a, tgts_a = make_inputs(k_a, 300)
    loss_a = jax.block_until_ready(piven_loss_pallas(outs_a, tgts_a))
    ref_a = piven_loss_reference(outs_a, tgts_a)
    assert jnp.allclose(loss_a, ref_a, rtol=1e-4, atol=1e-5), (loss_a, ref_a)

    # Test 2: multi-step grid (grid=(2,2)) exercising both the unmasked fast
    # path (core 0) and the masked tail path (core 1), N=3000.
    outs_b, tgts_b = make_inputs(k_b, 3000)
    loss_b = jax.block_until_ready(
        piven_loss_pallas(outs_b, tgts_b, max_tile_rows=8))
    ref_b = piven_loss_reference(outs_b, tgts_b)
    assert jnp.allclose(loss_b, ref_b, rtol=1e-4, atol=1e-5), (loss_b, ref_b)

    # Test 3: single core-split path, N=1000.
    outs_c, tgts_c = make_inputs(k_c, 1000)
    loss_c = jax.block_until_ready(
        piven_loss_pallas(outs_c, tgts_c, num_core_splits=1))
    ref_c = piven_loss_reference(outs_c, tgts_c)
    assert jnp.allclose(loss_c, ref_c, rtol=1e-4, atol=1e-5), (loss_c, ref_c)

    print("KERNEL_OK")
</pallas_src>

<mosaic_0001>
module attributes {stable_mosaic.version = 11 : i64} {
  func.func @piven_kernel(%arg0: i32, %arg1: i32, %arg2: memref<1xi32, #tpu.memory_space<smem>>, %arg3: memref<3x8x128xf32, #tpu.memory_space<vmem>>, %arg4: memref<8x128xf32, #tpu.memory_space<vmem>>, %arg5: memref<1x8x128xf32, #tpu.memory_space<vmem>>, %arg6: memref<1x8x128xf32, #tpu.memory_space<vmem>>, %arg7: memref<1x8x128xf32, #tpu.memory_space<vmem>>, %arg8: memref<1x8x128xf32, #tpu.memory_space<vmem>>) attributes {dimension_semantics = [#tpu.dimension_semantics<parallel>, #tpu.dimension_semantics<arbitrary>], iteration_bounds = array<i64: 2, 1>, scalar_prefetch = 1 : i64, scratch_operands = 0 : i64, tpu.core_type = #tpu.core_type<tc>, window_params = [{transform_indices = @transform_0, window_bounds = array<i64: 3, 8, 128>}, {transform_indices = @transform_1, window_bounds = array<i64: 8, 128>}, {transform_indices = @transform_2, window_bounds = array<i64: 1, 8, 128>}, {transform_indices = @transform_3, window_bounds = array<i64: 1, 8, 128>}, {transform_indices = @transform_4, window_bounds = array<i64: 1, 8, 128>}, {transform_indices = @transform_5, window_bounds = array<i64: 1, 8, 128>}]} {
    %c0_i32 = arith.constant 0 : i32
    %0 = arith.cmpi eq, %arg1, %c0_i32 : i32
    %1 = arith.extui %0 : i1 to i32
    %c0_i32_0 = arith.constant 0 : i32
    %2 = arith.cmpi ne, %1, %c0_i32_0 : i32
    scf.if %2 {
      %cst_17 = arith.constant 0.000000e+00 : f32
      %52 = vector.broadcast %cst_17 : f32 to vector<1x8x128xf32>
      %c0_18 = arith.constant 0 : index
      %c0_19 = arith.constant 0 : index
      %c0_20 = arith.constant 0 : index
      %53 = vector.load %arg5[%c0_18, %c0_19, %c0_20] : memref<1x8x128xf32, #tpu.memory_space<vmem>>, vector<1x8x128xf32>
      tpu.vector_store %arg5[%c0_18, %c0_19, %c0_20], %52 {strides = array<i32>} : memref<1x8x128xf32, #tpu.memory_space<vmem>>, vector<1x8x128xf32>,
      %cst_21 = arith.constant 0.000000e+00 : f32
      %54 = vector.broadcast %cst_21 : f32 to vector<1x8x128xf32>
      %c0_22 = arith.constant 0 : index
      %c0_23 = arith.constant 0 : index
      %c0_24 = arith.constant 0 : index
      %55 = vector.load %arg6[%c0_22, %c0_23, %c0_24] : memref<1x8x128xf32, #tpu.memory_space<vmem>>, vector<1x8x128xf32>
      tpu.vector_store %arg6[%c0_22, %c0_23, %c0_24], %54 {strides = array<i32>} : memref<1x8x128xf32, #tpu.memory_space<vmem>>, vector<1x8x128xf32>,
      %cst_25 = arith.constant 0.000000e+00 : f32
      %56 = vector.broadcast %cst_25 : f32 to vector<1x8x128xf32>
      %c0_26 = arith.constant 0 : index
      %c0_27 = arith.constant 0 : index
      %c0_28 = arith.constant 0 : index
      %57 = vector.load %arg7[%c0_26, %c0_27, %c0_28] : memref<1x8x128xf32, #tpu.memory_space<vmem>>, vector<1x8x128xf32>
      tpu.vector_store %arg7[%c0_26, %c0_27, %c0_28], %56 {strides = array<i32>} : memref<1x8x128xf32, #tpu.memory_space<vmem>>, vector<1x8x128xf32>,
      %cst_29 = arith.constant 0.000000e+00 : f32
      %58 = vector.broadcast %cst_29 : f32 to vector<1x8x128xf32>
      %c0_30 = arith.constant 0 : index
      %c0_31 = arith.constant 0 : index
      %c0_32 = arith.constant 0 : index
      %59 = vector.load %arg8[%c0_30, %c0_31, %c0_32] : memref<1x8x128xf32, #tpu.memory_space<vmem>>, vector<1x8x128xf32>
      tpu.vector_store %arg8[%c0_30, %c0_31, %c0_32], %58 {strides = array<i32>} : memref<1x8x128xf32, #tpu.memory_space<vmem>>, vector<1x8x128xf32>,
    } else {
    }
    %c0 = arith.constant 0 : index
    %c0_1 = arith.constant 0 : index
    %c0_2 = arith.constant 0 : index
    %3 = vector.load %arg3[%c0, %c0_1, %c0_2] : memref<3x8x128xf32, #tpu.memory_space<vmem>>, vector<1x8x128xf32>
    %4 = vector.shape_cast %3 : vector<1x8x128xf32> to vector<8x128xf32>
    %c1 = arith.constant 1 : index
    %c0_3 = arith.constant 0 : index
    %c0_4 = arith.constant 0 : index
    %5 = vector.load %arg3[%c1, %c0_3, %c0_4] : memref<3x8x128xf32, #tpu.memory_space<vmem>>, vector<1x8x128xf32>
    %6 = vector.shape_cast %5 : vector<1x8x128xf32> to vector<8x128xf32>
    %c2 = arith.constant 2 : index
    %c0_5 = arith.constant 0 : index
    %c0_6 = arith.constant 0 : index
    %7 = vector.load %arg3[%c2, %c0_5, %c0_6] : memref<3x8x128xf32, #tpu.memory_space<vmem>>, vector<1x8x128xf32>
    %8 = vector.shape_cast %7 : vector<1x8x128xf32> to vector<8x128xf32>
    %c0_7 = arith.constant 0 : index
    %c0_8 = arith.constant 0 : index
    %9 = vector.load %arg4[%c0_7, %c0_8] : memref<8x128xf32, #tpu.memory_space<vmem>>, vector<8x128xf32>
    %10 = arith.subf %4, %6 : vector<8x128xf32>
    %11 = math.absf %10 : vector<8x128xf32>
    %12 = arith.cmpf ogt, %4, %9 : vector<8x128xf32>
    %13 = arith.cmpf ogt, %9, %6 : vector<8x128xf32>
    %14 = arith.andi %12, %13 : vector<8x128xi1>
    %15 = arith.extui %14 : vector<8x128xi1> to vector<8x128xi32>
    %16 = arith.sitofp %15 : vector<8x128xi32> to vector<8x128xf32>
    %17 = arith.subf %4, %9 : vector<8x128xf32>
    %cst = arith.constant 1.600000e+02 : f32
    %18 = vector.broadcast %cst : f32 to vector<8x128xf32>
    %19 = arith.mulf %18, %17 : vector<8x128xf32>
    %20 = arith.negf %19 : vector<8x128xf32>
    %21 = math.exp %20 : vector<8x128xf32>
    %cst_9 = arith.constant 1.000000e+00 : f32
    %22 = vector.broadcast %cst_9 : f32 to vector<8x128xf32>
    %23 = arith.addf %22, %21 : vector<8x128xf32>
    %24 = arith.divf %22, %23 : vector<8x128xf32>
    %25 = arith.subf %9, %6 : vector<8x128xf32>
    %cst_10 = arith.constant 1.600000e+02 : f32
    %26 = vector.broadcast %cst_10 : f32 to vector<8x128xf32>
    %27 = arith.mulf %26, %25 : vector<8x128xf32>
    %28 = arith.negf %27 : vector<8x128xf32>
    %29 = math.exp %28 : vector<8x128xf32>
    %cst_11 = arith.constant 1.000000e+00 : f32
    %30 = vector.broadcast %cst_11 : f32 to vector<8x128xf32>
    %31 = arith.addf %30, %29 : vector<8x128xf32>
    %32 = arith.divf %30, %31 : vector<8x128xf32>
    %33 = arith.mulf %24, %32 : vector<8x128xf32>
    %34 = arith.mulf %8, %4 : vector<8x128xf32>
    %cst_12 = arith.constant 1.000000e+00 : f32
    %35 = vector.broadcast %cst_12 : f32 to vector<8x128xf32>
    %36 = arith.subf %35, %8 : vector<8x128xf32>
    %37 = arith.mulf %36, %6 : vector<8x128xf32>
    %38 = arith.addf %34, %37 : vector<8x128xf32>
    %39 = arith.subf %38, %9 : vector<8x128xf32>
    %40 = arith.mulf %39, %39 : vector<8x128xf32>
    %c1_i32 = arith.constant 1 : i32
    %41 = arith.muli %arg0, %c1_i32 : i32
    %42 = arith.addi %41, %arg1 : i32
    %c0_13 = arith.constant 0 : index
    %43 = memref.load %arg2[%c0_13] : memref<1xi32, #tpu.memory_space<smem>>
    %c1024_i32 = arith.constant 1024 : i32
    %44 = arith.muli %42, %c1024_i32 : i32
    %45 = arith.subi %43, %44 : i32
    %c1024_i32_14 = arith.constant 1024 : i32
    %46 = arith.cmpi slt, %45, %c1024_i32_14 : i32
    %true = arith.constant true
    %47 = arith.xori %46, %true : i1
    %48 = arith.extui %47 : i1 to i32
    %c0_i32_15 = arith.constant 0 : i32
    %49 = arith.cmpi ne, %48, %c0_i32_15 : i32
    scf.if %49 {
      %c0_17 = arith.constant 0 : index
      %c0_18 = arith.constant 0 : index
      %c0_19 = arith.constant 0 : index
      %52 = vector.load %arg5[%c0_17, %c0_18, %c0_19] : memref<1x8x128xf32, #tpu.memory_space<vmem>>, vector<1x8x128xf32>
      %53 = vector.shape_cast %52 : vector<1x8x128xf32> to vector<8x128xf32>
      %54 = arith.mulf %11, %16 : vector<8x128xf32>
      %55 = vector.shape_cast %54 : vector<8x128xf32> to vector<1x8x128xf32>
      %cst_20 = arith.constant dense<0.000000e+00> : vector<8x128xf32>
      %56 = vector.multi_reduction <add>, %55, %cst_20 [0] : vector<1x8x128xf32> to vector<8x128xf32>
      %57 = arith.addf %53, %56 : vector<8x128xf32>
      %c0_21 = arith.constant 0 : index
      %c0_22 = arith.constant 0 : index
      %c0_23 = arith.constant 0 : index
      %58 = vector.load %arg5[%c0_21, %c0_22, %c0_23] : memref<1x8x128xf32, #tpu.memory_space<vmem>>, vector<1x8x128xf32>
      %59 = vector.shape_cast %58 : vector<1x8x128xf32> to vector<8x128xf32>
      %60 = vector.shape_cast %57 : vector<8x128xf32> to vector<1x8x128xf32>
      tpu.vector_store %arg5[%c0_21, %c0_22, %c0_23], %60 {strides = array<i32>} : memref<1x8x128xf32, #tpu.memory_space<vmem>>, vector<1x8x128xf32>,
      %c0_24 = arith.constant 0 : index
      %c0_25 = arith.constant 0 : index
      %c0_26 = arith.constant 0 : index
      %61 = vector.load %arg6[%c0_24, %c0_25, %c0_26] : memref<1x8x128xf32, #tpu.memory_space<vmem>>, vector<1x8x128xf32>
      %62 = vector.shape_cast %61 : vector<1x8x128xf32> to vector<8x128xf32>
      %63 = vector.shape_cast %16 : vector<8x128xf32> to vector<1x8x128xf32>
      %cst_27 = arith.constant dense<0.000000e+00> : vector<8x128xf32>
      %64 = vector.multi_reduction <add>, %63, %cst_27 [0] : vector<1x8x128xf32> to vector<8x128xf32>
      %65 = arith.addf %62, %64 : vector<8x128xf32>
      %c0_28 = arith.constant 0 : index
      %c0_29 = arith.constant 0 : index
      %c0_30 = arith.constant 0 : index
      %66 = vector.load %arg6[%c0_28, %c0_29, %c0_30] : memref<1x8x128xf32, #tpu.memory_space<vmem>>, vector<1x8x128xf32>
      %67 = vector.shape_cast %66 : vector<1x8x128xf32> to vector<8x128xf32>
      %68 = vector.shape_cast %65 : vector<8x128xf32> to vector<1x8x128xf32>
      tpu.vector_store %arg6[%c0_28, %c0_29, %c0_30], %68 {strides = array<i32>} : memref<1x8x128xf32, #tpu.memory_space<vmem>>, vector<1x8x128xf32>,
      %c0_31 = arith.constant 0 : index
      %c0_32 = arith.constant 0 : index
      %c0_33 = arith.constant 0 : index
      %69 = vector.load %arg7[%c0_31, %c0_32, %c0_33] : memref<1x8x128xf32, #tpu.memory_space<vmem>>, vector<1x8x128xf32>
      %70 = vector.shape_cast %69 : vector<1x8x128xf32> to vector<8x128xf32>
      %71 = vector.shape_cast %33 : vector<8x128xf32> to vector<1x8x128xf32>
      %cst_34 = arith.constant dense<0.000000e+00> : vector<8x128xf32>
      %72 = vector.multi_reduction <add>, %71, %cst_34 [0] : vector<1x8x128xf32> to vector<8x128xf32>
      %73 = arith.addf %70, %72 : vector<8x128xf32>
      %c0_35 = arith.constant 0 : index
      %c0_36 = arith.constant 0 : index
      %c0_37 = arith.constant 0 : index
      %74 = vector.load %arg7[%c0_35, %c0_36, %c0_37] : memref<1x8x128xf32, #tpu.memory_space<vmem>>, vector<1x8x128xf32>
      %75 = vector.shape_cast %74 : vector<1x8x128xf32> to vector<8x128xf32>
      %76 = vector.shape_cast %73 : vector<8x128xf32> to vector<1x8x128xf32>
      tpu.vector_store %arg7[%c0_35, %c0_36, %c0_37], %76 {strides = array<i32>} : memref<1x8x128xf32, #tpu.memory_space<vmem>>, vector<1x8x128xf32>,
      %c0_38 = arith.constant 0 : index
      %c0_39 = arith.constant 0 : index
      %c0_40 = arith.constant 0 : index
      %77 = vector.load %arg8[%c0_38, %c0_39, %c0_40] : memref<1x8x128xf32, #tpu.memory_space<vmem>>, vector<1x8x128xf32>
      %78 = vector.shape_cast %77 : vector<1x8x128xf32> to vector<8x128xf32>
      %79 = vector.shape_cast %40 : vector<8x128xf32> to vector<1x8x128xf32>
      %cst_41 = arith.constant dense<0.000000e+00> : vector<8x128xf32>
      %80 = vector.multi_reduction <add>, %79, %cst_41 [0] : vector<1x8x128xf32> to vector<8x128xf32>
      %81 = arith.addf %78, %80 : vector<8x128xf32>
      %c0_42 = arith.constant 0 : index
      %c0_43 = arith.constant 0 : index
      %c0_44 = arith.constant 0 : index
      %82 = vector.load %arg8[%c0_42, %c0_43, %c0_44] : memref<1x8x128xf32, #tpu.memory_space<vmem>>, vector<1x8x128xf32>
      %83 = vector.shape_cast %82 : vector<1x8x128xf32> to vector<8x128xf32>
      %84 = vector.shape_cast %81 : vector<8x128xf32> to vector<1x8x128xf32>
      tpu.vector_store %arg8[%c0_42, %c0_43, %c0_44], %84 {strides = array<i32>} : memref<1x8x128xf32, #tpu.memory_space<vmem>>, vector<1x8x128xf32>,
    } else {
    }
    %50 = arith.extui %46 : i1 to i32
    %c0_i32_16 = arith.constant 0 : i32
    %51 = arith.cmpi ne, %50, %c0_i32_16 : i32
    scf.if %51 {
      %52 = tpu.iota {dimensions = array<i32: 0>} : vector<8x128xi32>
      %53 = tpu.iota {dimensions = array<i32: 1>} : vector<8x128xi32>
      %c128_i32 = arith.constant 128 : i32
      %54 = vector.broadcast %c128_i32 : i32 to vector<8x128xi32>
      %55 = arith.muli %52, %54 : vector<8x128xi32>
      %56 = arith.addi %55, %53 : vector<8x128xi32>
      %57 = vector.broadcast %45 : i32 to vector<8x128xi32>
      %58 = arith.cmpi slt, %56, %57 : vector<8x128xi32>
      %cst_17 = arith.constant 0.000000e+00 : f32
      %59 = vector.broadcast %cst_17 : f32 to vector<8x128xf32>
      %60 = arith.select %58, %16, %59 : vector<8x128xi1>, vector<8x128xf32>
      %c0_18 = arith.constant 0 : index
      %c0_19 = arith.constant 0 : index
      %c0_20 = arith.constant 0 : index
      %61 = vector.load %arg5[%c0_18, %c0_19, %c0_20] : memref<1x8x128xf32, #tpu.memory_space<vmem>>, vector<1x8x128xf32>
      %62 = vector.shape_cast %61 : vector<1x8x128xf32> to vector<8x128xf32>
      %63 = arith.mulf %11, %60 : vector<8x128xf32>
      %64 = vector.shape_cast %63 : vector<8x128xf32> to vector<1x8x128xf32>
      %cst_21 = arith.constant dense<0.000000e+00> : vector<8x128xf32>
      %65 = vector.multi_reduction <add>, %64, %cst_21 [0] : vector<1x8x128xf32> to vector<8x128xf32>
      %66 = arith.addf %62, %65 : vector<8x128xf32>
      %c0_22 = arith.constant 0 : index
      %c0_23 = arith.constant 0 : index
      %c0_24 = arith.constant 0 : index
      %67 = vector.load %arg5[%c0_22, %c0_23, %c0_24] : memref<1x8x128xf32, #tpu.memory_space<vmem>>, vector<1x8x128xf32>
      %68 = vector.shape_cast %67 : vector<1x8x128xf32> to vector<8x128xf32>
      %69 = vector.shape_cast %66 : vector<8x128xf32> to vector<1x8x128xf32>
      tpu.vector_store %arg5[%c0_22, %c0_23, %c0_24], %69 {strides = array<i32>} : memref<1x8x128xf32, #tpu.memory_space<vmem>>, vector<1x8x128xf32>,
      %c0_25 = arith.constant 0 : index
      %c0_26 = arith.constant 0 : index
      %c0_27 = arith.constant 0 : index
      %70 = vector.load %arg6[%c0_25, %c0_26, %c0_27] : memref<1x8x128xf32, #tpu.memory_space<vmem>>, vector<1x8x128xf32>
      %71 = vector.shape_cast %70 : vector<1x8x128xf32> to vector<8x128xf32>
      %72 = vector.shape_cast %60 : vector<8x128xf32> to vector<1x8x128xf32>
      %cst_28 = arith.constant dense<0.000000e+00> : vector<8x128xf32>
      %73 = vector.multi_reduction <add>, %72, %cst_28 [0] : vector<1x8x128xf32> to vector<8x128xf32>
      %74 = arith.addf %71, %73 : vector<8x128xf32>
      %c0_29 = arith.constant 0 : index
      %c0_30 = arith.constant 0 : index
      %c0_31 = arith.constant 0 : index
      %75 = vector.load %arg6[%c0_29, %c0_30, %c0_31] : memref<1x8x128xf32, #tpu.memory_space<vmem>>, vector<1x8x128xf32>
      %76 = vector.shape_cast %75 : vector<1x8x128xf32> to vector<8x128xf32>
      %77 = vector.shape_cast %74 : vector<8x128xf32> to vector<1x8x128xf32>
      tpu.vector_store %arg6[%c0_29, %c0_30, %c0_31], %77 {strides = array<i32>} : memref<1x8x128xf32, #tpu.memory_space<vmem>>, vector<1x8x128xf32>,
      %c0_32 = arith.constant 0 : index
      %c0_33 = arith.constant 0 : index
      %c0_34 = arith.constant 0 : index
      %78 = vector.load %arg7[%c0_32, %c0_33, %c0_34] : memref<1x8x128xf32, #tpu.memory_space<vmem>>, vector<1x8x128xf32>
      %79 = vector.shape_cast %78 : vector<1x8x128xf32> to vector<8x128xf32>
      %cst_35 = arith.constant 0.000000e+00 : f32
      %80 = vector.broadcast %cst_35 : f32 to vector<8x128xf32>
      %81 = arith.select %58, %33, %80 : vector<8x128xi1>, vector<8x128xf32>
      %82 = vector.shape_cast %81 : vector<8x128xf32> to vector<1x8x128xf32>
      %cst_36 = arith.constant dense<0.000000e+00> : vector<8x128xf32>
      %83 = vector.multi_reduction <add>, %82, %cst_36 [0] : vector<1x8x128xf32> to vector<8x128xf32>
      %84 = arith.addf %79, %83 : vector<8x128xf32>
      %c0_37 = arith.constant 0 : index
      %c0_38 = arith.constant 0 : index
      %c0_39 = arith.constant 0 : index
      %85 = vector.load %arg7[%c0_37, %c0_38, %c0_39] : memref<1x8x128xf32, #tpu.memory_space<vmem>>, vector<1x8x128xf32>
      %86 = vector.shape_cast %85 : vector<1x8x128xf32> to vector<8x128xf32>
      %87 = vector.shape_cast %84 : vector<8x128xf32> to vector<1x8x128xf32>
      tpu.vector_store %arg7[%c0_37, %c0_38, %c0_39], %87 {strides = array<i32>} : memref<1x8x128xf32, #tpu.memory_space<vmem>>, vector<1x8x128xf32>,
      %c0_40 = arith.constant 0 : index
      %c0_41 = arith.constant 0 : index
      %c0_42 = arith.constant 0 : index
      %88 = vector.load %arg8[%c0_40, %c0_41, %c0_42] : memref<1x8x128xf32, #tpu.memory_space<vmem>>, vector<1x8x128xf32>
      %89 = vector.shape_cast %88 : vector<1x8x128xf32> to vector<8x128xf32>
      %cst_43 = arith.constant 0.000000e+00 : f32
      %90 = vector.broadcast %cst_43 : f32 to vector<8x128xf32>
      %91 = arith.select %58, %40, %90 : vector<8x128xi1>, vector<8x128xf32>
      %92 = vector.shape_cast %91 : vector<8x128xf32> to vector<1x8x128xf32>
      %cst_44 = arith.constant dense<0.000000e+00> : vector<8x128xf32>
      %93 = vector.multi_reduction <add>, %92, %cst_44 [0] : vector<1x8x128xf32> to vector<8x128xf32>
      %94 = arith.addf %89, %93 : vector<8x128xf32>
      %c0_45 = arith.constant 0 : index
      %c0_46 = arith.constant 0 : index
      %c0_47 = arith.constant 0 : index
      %95 = vector.load %arg8[%c0_45, %c0_46, %c0_47] : memref<1x8x128xf32, #tpu.memory_space<vmem>>, vector<1x8x128xf32>
      %96 = vector.shape_cast %95 : vector<1x8x128xf32> to vector<8x128xf32>
      %97 = vector.shape_cast %94 : vector<8x128xf32> to vector<1x8x128xf32>
      tpu.vector_store %arg8[%c0_45, %c0_46, %c0_47], %97 {strides = array<i32>} : memref<1x8x128xf32, #tpu.memory_space<vmem>>, vector<1x8x128xf32>,
    } else {
    }
    return
  }
  func.func @transform_0(%arg0: i32, %arg1: i32, %arg2: memref<1xi32, #tpu.memory_space<smem>>) -> (i32, i32, i32) {
    %c1_i32 = arith.constant 1 : i32
    %0 = arith.muli %arg0, %c1_i32 : i32
    %1 = arith.addi %0, %arg1 : i32
    %c0_i32 = arith.constant 0 : i32
    %c0_i32_0 = arith.constant 0 : i32
    %c0_i32_1 = arith.constant 0 : i32
    return %c0_i32, %1, %c0_i32_0 : i32, i32, i32
  }
  func.func @transform_1(%arg0: i32, %arg1: i32, %arg2: memref<1xi32, #tpu.memory_space<smem>>) -> (i32, i32) {
    %c1_i32 = arith.constant 1 : i32
    %0 = arith.muli %arg0, %c1_i32 : i32
    %1 = arith.addi %0, %arg1 : i32
    %c0_i32 = arith.constant 0 : i32
    %c0_i32_0 = arith.constant 0 : i32
    return %1, %c0_i32 : i32, i32
  }
  func.func @transform_2(%arg0: i32, %arg1: i32, %arg2: memref<1xi32, #tpu.memory_space<smem>>) -> (i32, i32, i32) {
    %c0_i32 = arith.constant 0 : i32
    %c0_i32_0 = arith.constant 0 : i32
    %c0_i32_1 = arith.constant 0 : i32
    return %arg0, %c0_i32, %c0_i32_0 : i32, i32, i32
  }
  func.func @transform_3(%arg0: i32, %arg1: i32, %arg2: memref<1xi32, #tpu.memory_space<smem>>) -> (i32, i32, i32) {
    %c0_i32 = arith.constant 0 : i32
    %c0_i32_0 = arith.constant 0 : i32
    %c0_i32_1 = arith.constant 0 : i32
    return %arg0, %c0_i32, %c0_i32_0 : i32, i32, i32
  }
  func.func @transform_4(%arg0: i32, %arg1: i32, %arg2: memref<1xi32, #tpu.memory_space<smem>>) -> (i32, i32, i32) {
    %c0_i32 = arith.constant 0 : i32
    %c0_i32_0 = arith.constant 0 : i32
    %c0_i32_1 = arith.constant 0 : i32
    return %arg0, %c0_i32, %c0_i32_0 : i32, i32, i32
  }
  func.func @transform_5(%arg0: i32, %arg1: i32, %arg2: memref<1xi32, #tpu.memory_space<smem>>) -> (i32, i32, i32) {
    %c0_i32 = arith.constant 0 : i32
    %c0_i32_0 = arith.constant 0 : i32
    %c0_i32_1 = arith.constant 0 : i32
    return %arg0, %c0_i32, %c0_i32_0 : i32, i32, i32
  }
}

</mosaic_0001>

<bundles_post_ra>
// kernel: tpu_custom_call.1
= control target key start
LH: loop header
LB: loop body
LE: loop exit
PB: predicated region body
PF: predicated region fallthrough
CT: control target
= control target key end

     0   :  { %s1457_s0 = inlined_call_operand.<no memory space> [shape: s32[1], index: 0, kind: input, shape index: {}]   ;;  %s1458_s1 = inlined_call_operand.hbm [shape: f32[3,16,128], index: 1, kind: input, shape index: {}]   ;;  %s1459_s2 = inlined_call_operand.hbm [shape: f32[16,128], index: 2, kind: input, shape index: {}]   ;;  %s1460_s3 = inlined_call_operand.hbm [shape: f32[2,8,128], index: 3, kind: output, shape index: {0}]   ;;  %s1461_s4 = inlined_call_operand.hbm [shape: f32[2,8,128], index: 4, kind: output, shape index: {1}]   ;;  %s1462_s5 = inlined_call_operand.hbm [shape: f32[2,8,128], index: 5, kind: output, shape index: {2}]   ;;  %s1463_s6 = inlined_call_operand.hbm [shape: f32[2,8,128], index: 6, kind: output, shape index: {3}]  }
   0x1   :  { %1469 = sst [smem:[#allocation22_spill]] %s1458_s1 }
   0x2   :  { %12 = sst [smem:[#allocation3]] %s1457_s0 }
   0x3   :  { %13 = vsyncpa [#allocation5], 0 }
   0x4   :  { %15 = vsyncpa [#allocation5 + $0x1], 0 }
   0x5   :  { %16 = vsyncpa [#allocation8], 0 }
   0x6   :  { %18 = vsyncpa [#allocation8 + $0x1], 0 }
   0x7   :  { %19 = vsyncpa [#allocation6], 0 }
   0x8   :  { %21 = vsyncpa [#allocation6 + $0x1], 0 }
   0x9   :  { %22 = vsyncpa [#allocation11], 0 }
   0xa   :  { %24 = vsyncpa [#allocation11 + $0x1], 0 }
   0xb   :  { %25 = vsyncpa [#allocation14], 0 }
   0xc   :  { %27 = vsyncpa [#allocation14 + $0x1], 0  ;;  %s1109_s23 = smov 0   ;;  %s1111_s24 = smov 0  }
   0xd   :  { %s1113_s25 = smov 0   ;;  %s1115_s26 = smov 0  }
   0xe   :  { %s1117_s27 = smov 0   ;;  %s1119_s0 = smov 0  }
   0xf LB: > { %s1140_s28 = sadd.s32 4294967295, %s1059_s0   ;;  %s1464_s29 = sadd.s32 4294967294, %s1059_s0   ;;  %s1059_s0 = sphi %s1119_s0, %s33_s0   ;;  %s1055_s27 = sphi %s1117_s27, %s1492_s27   ;;  %s1051_s26 = sphi %s1115_s26, %s1491_s26   ;;  %s1047_s25 = sphi %s1113_s25, %s1490_s25   ;;  %s1043_s24 = sphi %s1111_s24, %s1489_s24   ;;  %s1039_s23 = sphi %s1109_s23, %s1488_s23  }
  0x10   : > { %s45_s30 = sadd.s32 1, %s1055_s27  ;;  %s54_s7 = sadd.s32 1, %s1047_s25 }
  0x11   : > { %p47_p0 = scmp.ge.s32.totalorder %s45_s30, 2  ;;  %p61_p1 = scmp.ne.s32.totalorder %s1047_s25, %s1043_s24 }
  0x12   : > { %p62_p2 = scmp.eq.s32.totalorder %s1059_s0, 0  ;;  %p67_p3 = scmp.ne.s32.totalorder %s1043_s24, %s1039_s23 }
  0x13   : > { %s1494_s30 = smov (%p47_p0, %s45_s30), 0  ;;  %p68_p5 = scmp.eq.s32.totalorder %s1140_s28, 0 }
  0x14   : > { %1470 = sst [smem:[#allocation20_spill]] %s1494_s30  ;;  %p1152_p4 = por %p62_p2, %p61_p1 }
  0x15   : > { %s51_s9 = ssub.s32 %s1055_s27, %s1494_s30  ;;  %p119_p6 = scmp.eq.s32.totalorder %s1140_s28, 1 }
  0x16   : > { %p52_p7 = scmp.eq.s32.totalorder %s51_s9, 0  ;;  %p1160_p8 = por %p68_p5, %p67_p3 }
  0x17   : > { %p1164_p9 = por %p119_p6, %p61_p1  ;;  %p125_p10 = scmp.eq.s32.totalorder %s1464_s29, 1 }
  0x18   : > { %s1472_s10 = scalar_select %p1160_p8, 1, 0 }
  0x19   : > { %s1473_s11 = scalar_select %p1164_p9, 1, 0 }
  0x1a   : > { %s1171_s12 = scalar_select %p52_p7, %s1047_s25, %s54_s7  }
  0x1b   : > { %p1173_p11 = por %p125_p10, %p67_p3  ;;  %p759_p13 = scmp.lt.s32.totalorder %s1059_s0, 2 }
  0x1c   : > { %1474 = sst [smem:[#allocation21_spill]] %s1171_s12  ;;  %s1180_s14 = sand.u32 1, %s1047_s25  }
  0x1d   : > { %s1475_s13 = scalar_select %p1173_p11, 1, 0 }
  0x1e   : > { %s725_s15 = smul.u32 24, %s1180_s14  ;;  %s1465_s16 = sshll.u32 %s1055_s27, 7 }
  0x1f   : > { %p1186_p0 = pnand %p759_p13, %p1152_p4  ;;  %s1477_s1 = sld [smem:[#allocation22_spill]] }
  0x20   : > { %s227_s21 = scalar_lea.vmem [#allocation4], %s725_s15  ;;  %s224_s7 = scalar_lea.sflag [#allocation5], %s1180_s14 }
  0x21   : > { %s234_s22 = sshll.u32 %s227_s21, 4  ;;  %p823_p2 = pneg %p1186_p0  ;;  %s1197_s22 = int_to_ptr.vmem [resolvable:$true] %s234_s22 }
  0x25   : > { %s1195_s20 = scalar_lea.hbm %s1477_s1, %s1465_s16  ;;  %s826_s19 = scalar_lea.hbm %s1477_s1, 768 }
  0x26   : > { %s821_s8 = scalar_lea.hbm %s1195_s20, 384  ;;  %p827_p5 = scmp.lt.u32.totalorder %s1195_s20, %s1477_s1 }
  0x27   : > { %p822_p1 = scmp.ne.s32.totalorder %s1195_s20, %s821_s8  ;;  %p828_p6 = scmp.lt.u32.totalorder %s826_s19, %s821_s8 }
  0x28   : > { %p830_p10 = scmp.lt.u32.totalorder %s821_s8, %s1195_s20 }
  0x29   : > { %p824_p3 = pnand %p823_p2, %p822_p1  ;;  %p829_p7 = por %p828_p6, %p827_p5 }
  0x2b   : > { %p825_p4 = pneg %p824_p3  ;;  %p831_p13 = por %p830_p10, %p829_p7 }
  0x2d   : > { %p832_p12 = pnand %p831_p13, %p825_p4 }
  0x2f   : > { %835 = shalt.err (!%p832_p12)
}
  0x30   : > { %s836_s15 = scalar_lea.vmem %s1197_s22, 384  ;;  %s1061_s21 = smov [#allocation4]  }
  0x31   : > { %p837_p1 = scmp.ne.s32.totalorder %s1197_s22, %s836_s15  ;;  %s841_s9 = sshll.u32 %s1061_s21, 4  ;;  %s842_s9 = int_to_ptr.vmem [resolvable:$false] %s841_s9 }
  0x32   : > { %s843_s29 = scalar_lea.vmem %s842_s9, 768  ;;  %p844_p9 = scmp.lt.s32.totalorder %s1197_s22, %s842_s9 }
  0x33   : > { %p839_p3 = pnand %p837_p1, %p823_p2  ;;  %p845_p5 = scmp.lt.s32.totalorder %s843_s29, %s836_s15 }
  0x35   : > { %p840_p11 = pneg %p839_p3  ;;  %p846_p6 = por %p845_p5, %p844_p9 }
  0x37   : > { %p847_p7 = pnand %p846_p6, %p840_p11 }
  0x39   : > { %850 = shalt.err (!%p847_p7)
}
  0x3a   : > { %s1062_s16 = smov 256   ;;  %s1063_s8 = smov 128  }
  0x3b   : > { %s1064_s18 = smov 8   ;;  %p701_p12 = scmp.ge.s32.totalorder %s1059_s0, 1 }
  0x3c   : > { %742 = dma.hbm_to_vmem [thread:$0]  (!%p1186_p0), %s1195_s20, 384, %s1197_s22, %s224_s7, %s1062_s16, %s1063_s8, %s1064_s18  }
  0x3d   : > { %p261_p9 = scmp.lt.s32.totalorder %s1059_s0, 3  ;;  %s699_s19 = sshll.u32 %s1180_s14, 3 }
  0x3e   : > { %s1479_s21 = sshll.u32 %s1055_s27, 7  ;;  %s248_s30 = scalar_lea.vmem [#allocation7], %s699_s19 }
  0x3f   : > { %p1230_p11 = pnand %p701_p12, %p261_p9  ;;  %s1239_s1 = scalar_lea.hbm %s1459_s2, %s1479_s21 }
  0x40   : > { %s256_s12 = sshll.u32 %s248_s30, 4  ;;  %s245_s20 = scalar_lea.sflag [#allocation8], %s1180_s14  ;;  %s257_s12 = int_to_ptr.vmem [resolvable:$true] %s256_s12 }
  0x41   : > { %s1478_s15 = scalar_select %p1230_p11, 1, 0 }
  0x42   : > { %s851_s22 = scalar_lea.hbm %s1239_s1, 128  ;;  %s856_s8 = scalar_lea.hbm %s1459_s2, 256 }
  0x43   : > { %p852_p4 = scmp.ne.s32.totalorder %s1239_s1, %s851_s22  ;;  %p857_p1 = scmp.lt.u32.totalorder %s1239_s1, %s1459_s2 }
  0x44   : > { %p858_p3 = scmp.lt.u32.totalorder %s856_s8, %s851_s22  ;;  %p860_p6 = scmp.lt.u32.totalorder %s851_s22, %s1239_s1 }
  0x45   : > { %p854_p10 = pnand %p852_p4, %p823_p2 }
  0x46   : > { %p859_p5 = por %p858_p3, %p857_p1 }
  0x47   : > { %p855_p13 = pneg %p854_p10 }
  0x48   : > { %p861_p7 = por %p860_p6, %p859_p5 }
  0x4a   : > { %p862_p12 = pnand %p861_p7, %p855_p13 }
  0x4c   : > { %865 = shalt.err (!%p862_p12)
}
  0x4d   : > { %s866_s30 = scalar_lea.vmem %s257_s12, 128  ;;  %s1065_s14 = smov [#allocation7]  }
  0x4e   : > { %p867_p9 = scmp.ne.s32.totalorder %s257_s12, %s866_s30  ;;  %s871_s19 = sshll.u32 %s1065_s14, 4  ;;  %s872_s19 = int_to_ptr.vmem [resolvable:$false] %s871_s19 }
  0x4f   : > { %s873_s9 = scalar_lea.vmem %s872_s19, 256  ;;  %p874_p8 = scmp.lt.s32.totalorder %s257_s12, %s872_s19 }
  0x50   : > { %p869_p4 = pnand %p867_p9, %p823_p2  ;;  %p875_p11 = scmp.lt.s32.totalorder %s873_s9, %s866_s30 }
  0x52   : > { %p870_p10 = pneg %p869_p4  ;;  %p876_p1 = por %p875_p11, %p874_p8 }
  0x54   : > { %p877_p3 = pnand %p876_p1, %p870_p10 }
  0x56   : > { %880 = shalt.err (!%p877_p3)
}
  0x57   : > { %745 = dma.hbm_to_vmem [thread:$0]  (!%p1186_p0), %s1239_s1, 128, %s257_s12, %s245_s20  }
  0x58   : > { %p1480_p13 = scmp.ne.s32.totalorder %s1478_s15, 0 }
  0x59   : > { %s1264_s29 = sand.u32 (!%p1480_p13), 1, %s1043_s24   ;;  %p1481_p2 = scmp.ne.s32.totalorder (!%p1480_p13), %s1472_s10, 0 }
  0x5a   : > { %265 = sbr.rel (%p1480_p13) target bundleno = 252 (0xfc), region = 28  ;;  %s268_s7 = scalar_lea.sflag (!%p1480_p13), [#allocation5], %s1264_s29 }
  0x5b   : > { %s726_s22 = smul.u32 (!%p1480_p13), 24, %s1264_s29 }
  0x5d   : > { %s271_s16 = scalar_lea.vmem (!%p1480_p13), [#allocation4], %s726_s22 }
  0x61   : > { %1018 = dma.done.wait (%p1481_p2), %s268_s7, 384  }
  0x62   : > { %1020 = vsyncadd (%p1481_p2), %s268_s7, 4294966912  ;;  %s702_s1 = sshll.u32 %s1264_s29, 3  ;;  %s277_s12 = scalar_lea.sflag [#allocation8], %s1264_s29 }
  0x63   : > { %s280_s17 = scalar_lea.vmem [#allocation7], %s702_s1 }
  0x64   : > { %1022 = dma.done.wait (%p1481_p2), %s277_s12, 128  }
  0x65   : > { %1024 = vsyncadd (%p1481_p2), %s277_s12, 4294967168  ;;  %s374_s15 = sld [smem:[#allocation3]]  ;;  %s1278_s20 = scalar_lea.vmem [#allocation9], %s702_s1  ;;  %v1066_v0 = vmov 0.0   ;;  %v337_v1 = vld [vmem:[%s271_s16] sm:$0xff]  ;;  %v707_v2 = vld [vmem:[%s271_s16 + $0x8] sm:$0xff] }
  0x66   : > { %333 = vst [vmem:[%s1278_s20] sm:$0xff] %v1066_v0  ;;  %s1281_s8 = scalar_lea.vmem [#allocation10], %s702_s1  ;;  %s1284_s18 = scalar_lea.vmem [#allocation12], %s702_s1  ;;  %v708_v3 = vld [vmem:[%s271_s16 + $0x10] sm:$0xff]  ;;  %v343_v5 = vsub.f32 %v337_v1, %v707_v2 }
  0x67   : > { %334 = vst [vmem:[%s1281_s8] sm:$0xff] %v1066_v0  ;;  %335 = vst [vmem:[%s1284_s18] sm:$0xff] %v1066_v0  ;;  %s1287_s21 = scalar_lea.vmem [#allocation13], %s702_s1  ;;  %s712_s10 = sshll.u32 %s1051_s26, 10  ;;  %v342_v4 = vld [vmem:[%s280_s17] sm:$0xff]  ;;  %v367_v6 = vmul.f32 %v708_v3, %v337_v1  ;;  %v368_v7 = vsub.f32 1.0, %v708_v3 }
  0x68   : > { %336 = vst [vmem:[%s1287_s21] sm:$0xff] %v1066_v0  ;;  %vm345_vm0 = vcmp.gt.f32.partialorder %v337_v1, %v342_v4  ;;  %vm346_vm1 = vcmp.gt.f32.partialorder %v342_v4, %v707_v2  ;;  %v350_v8 = vsub.f32 %v337_v1, %v342_v4  ;;  %v358_v9 = vsub.f32 %v342_v4, %v707_v2 }
  0x69   : > { %v344_v10 = vand.u32 2147483647, %v343_v5  ;;  %vm347_vm2 = vmand %vm345_vm0, %vm346_vm1  ;;  %v369_v11 = vmul.f32 %v707_v2, %v368_v7 }
  0x6a   : > { %v709_v12 = vsel %vm347_vm2, 1.0, %v1066_v0  ;;  %v710_v13 = vmul.f32 -160.0, %v350_v8  ;;  %v711_v14 = vmul.f32 -160.0, %v358_v9 }
  0x6b   : > { %s1291_s30 = ssub.s32 %s374_s15, %s712_s10  ;;  %v370_v15 = vadd.f32 %v369_v11, %v367_v6 }
  0x6c   : > { %v353_v16 = vmul.f32 1.442695, %v710_v13  ;;  %v361_v17 = vmul.f32 1.442695, %v711_v14  ;;  %p713_p8 = scmp.lt.s32.totalorder %s1291_s30, 1024 }
  0x6d   : > { %v371_v18 = vsub.f32 %v370_v15, %v342_v4  ;;  %v382_v27 = vld [vmem:[%s1278_s20] sm:$0xff] (!%p713_p8)  ;;  %v383_v28 = vmul.f32 (!%p713_p8), %v709_v12, %v344_v10 }
  0x6e   : > { %813 = vpow2.f32 %v353_v16  ;;  %v387_v29 = vld [vmem:[%s1281_s8] sm:$0xff] (!%p713_p8)  ;;  %v391_v30 = vld [vmem:[%s1284_s18] sm:$0xff] (!%p713_p8) }
  0x6f   : > { %815 = vpow2.f32 %v361_v17  ;;  %v372_v19 = vmul.f32 %v371_v18, %v371_v18  ;;  %v389_v31 = vadd.f32 (!%p713_p8), %v709_v12, %v387_v29  ;;  %v395_v33 = vld [vmem:[%s1287_s21] sm:$0xff] (!%p713_p8)  ;;  %v385_v34 = vadd.f32 (!%p713_p8), %v383_v28, %v382_v27 }
  0x71   : > { %v397_v35 = vadd.f32 (!%p713_p8), %v395_v33, %v372_v19  ;;  %390 = vst [vmem:[%s1281_s8] sm:$0xff] (!%p713_p8), %v389_v31  ;;  %386 = vst [vmem:[%s1278_s20] sm:$0xff] (!%p713_p8), %v385_v34 }
  0x73   : > { %398 = vst [vmem:[%s1287_s21] sm:$0xff] (!%p713_p8), %v397_v35 }
  0x78   : > { %v814_v20 = vpop.eup %813 }
  0x79   : > { %v816_v21 = vpop.eup %815  ;;  %v355_v22 = vadd.f32 1.0, %v814_v20 }
  0x7a   : > { %v363_v23 = vadd.f32 1.0, %v816_v21 }
  0x7b   : > { %817 = vrcp.f32 %v355_v22 }
  0x7c   : > { %819 = vrcp.f32 %v363_v23 }
  0x81   : > { %381 = sbr.rel (%p713_p8) target bundleno = 140 (0x8c), region = 44 }
  0x85   : > { %v818_v24 = vpop.eup %817 }
  0x86   : > { %v820_v25 = vpop.eup %819 }
  0x87   : > { %v366_v26 = vmul.f32 %v820_v25, %v818_v24 }
  0x89   : > { %v393_v32 = vadd.f32 %v391_v30, %v366_v26 }
  0x8b   : > { %394 = vst [vmem:[%s1284_s18] sm:$0xff] %v393_v32 }
  0x8c PF: > { %p714_p0 = scmp.ge.s32.totalorder %s1291_s30, 1024 }
  0x8d   : > { %v402_v36 = vlaneseq (!%p714_p0)  ;;  %v408_v40 = vstv (!%p714_p0), %s1291_s30  ;;  %v416_v42 = vld [vmem:[%s1281_s8] sm:$0xff] (!%p714_p0)  ;;  %v411_v46 = vld [vmem:[%s1278_s20] sm:$0xff] (!%p714_p0) }
  0x8e   : > { %401 = sbr.rel (%p714_p0) target bundleno = 156 (0x9c), region = 48  ;;  %v425_v44 = vld [vmem:[%s1287_s21] sm:$0xff] (!%p714_p0) }
  0x8f   : > { %v403_v37 = vshrl.u32 (!%p714_p0), %v402_v36, 7  ;;  %v405_v38 = vand.u32 (!%p714_p0), 127, %v402_v36 }
  0x91   : > { %v406_v39 = vmul.u32 (!%p714_p0), 128, %v403_v37 }
  0x92   : > { %v420_v43 = vld [vmem:[%s1284_s18] sm:$0xff] (!%p714_p0) }
  0x93   : > { %v407_v41 = vadd.s32 (!%p714_p0), %v406_v39, %v405_v38 }
  0x95   : > { %vm409_vm3 = vcmp.lt.s32.totalorder %v407_v41, %v408_v40 }
  0x96   : > { %v410_v45 = vsel %vm409_vm3, %v709_v12, 0.0  ;;  %v421_v47 = vsel %vm409_vm3, %v366_v26, 0.0  ;;  %v426_v48 = vsel %vm409_vm3, %v372_v19, 0.0 }
  0x97   : > { %v412_v49 = vmul.f32 %v410_v45, %v344_v10  ;;  %v418_v50 = vadd.f32 %v416_v42, %v410_v45  ;;  %v423_v51 = vadd.f32 %v421_v47, %v420_v43  ;;  %v428_v52 = vadd.f32 %v426_v48, %v425_v44 }
  0x99   : > { %v414_v53 = vadd.f32 %v412_v49, %v411_v46  ;;  %419 = vst [vmem:[%s1281_s8] sm:$0xff] %v418_v50  ;;  %424 = vst [vmem:[%s1284_s18] sm:$0xff] %v423_v51 }
  0x9a   : > { %429 = vst [vmem:[%s1287_s21] sm:$0xff] %v428_v52 }
  0x9b   : > { %415 = vst [vmem:[%s1278_s20] sm:$0xff] %v414_v53 }
  0x9c PF: > { %s435_s14 = sand.u32 1, %s1140_s28   ;;  %s1314_s19 = sshll.u32 %s1051_s26, 7 }
  0x9d   : > { %s1320_s7 = scalar_lea.hbm %s1461_s4, %s1314_s19  ;;  %s472_s16 = sshll.u32 %s1281_s8, 4  ;;  %s1323_s16 = int_to_ptr.vmem [resolvable:$true] %s472_s16 }
  0x9e   : > { %s1329_s17 = scalar_lea.hbm %s1460_s3, %s1314_s19  ;;  %s1331_s26 = scalar_lea.sflag [#allocation11], %s435_s14 }
  0x9f   : > { %s881_s28 = scalar_lea.vmem %s1323_s16, 128  ;;  %p1482_p5 = scmp.ne.s32.totalorder %s1473_s11, 0 }
  0xa0   : > { %p882_p11 = scmp.ne.s32.totalorder %s1323_s16, %s881_s28  ;;  %s1067_s15 = smov [#allocation10]  }
  0xa1   : > { %s885_s10 = sshll.u32 %s1067_s15, 4  ;;  %s886_s10 = int_to_ptr.vmem [resolvable:$false] %s885_s10 }
  0xa2   : > { %p883_p6 = pnand %p882_p11, %p1482_p5  ;;  %s887_s8 = scalar_lea.vmem %s886_s10, 256 }
  0xa3   : > { %p888_p12 = scmp.lt.s32.totalorder %s1323_s16, %s886_s10  ;;  %p889_p9 = scmp.lt.s32.totalorder %s887_s8, %s881_s28 }
  0xa4   : > { %p884_p7 = pneg %p883_p6 }
  0xa5   : > { %p890_p4 = por %p889_p9, %p888_p12 }
  0xa7   : > { %p891_p10 = pnand %p890_p4, %p884_p7 }
  0xa9   : > { %894 = shalt.err (!%p891_p10)
}
  0xaa   : > { %s895_s30 = scalar_lea.hbm %s1320_s7, 128  ;;  %s899_s22 = scalar_lea.hbm %s1461_s4, 256 }
  0xab   : > { %p896_p1 = scmp.ne.s32.totalorder %s1320_s7, %s895_s30  ;;  %p900_p2 = scmp.lt.u32.totalorder %s1320_s7, %s1461_s4 }
  0xac   : > { %p901_p8 = scmp.lt.u32.totalorder %s899_s22, %s895_s30  ;;  %p903_p11 = scmp.lt.u32.totalorder %s895_s30, %s1320_s7 }
  0xad   : > { %p897_p3 = pnand %p896_p1, %p1482_p5 }
  0xae   : > { %p902_p0 = por %p901_p8, %p900_p2 }
  0xaf   : > { %p898_p13 = pneg %p897_p3 }
  0xb0   : > { %p904_p6 = por %p903_p11, %p902_p0 }
  0xb2   : > { %p905_p7 = pnand %p904_p6, %p898_p13 }
  0xb4   : > { %908 = shalt.err (!%p905_p7)
}
  0xb5   : > { %732 = dma.vmem_to_hbm [thread:$0]  (%p1482_p5), %s1323_s16, 128, %s1320_s7, %s1331_s26  }
  0xb6   : > { %s459_s28 = sshll.u32 %s1278_s20, 4  ;;  %s1360_s8 = scalar_lea.hbm %s1462_s5, %s1314_s19  ;;  %s1362_s28 = int_to_ptr.vmem [resolvable:$true] %s459_s28 }
  0xb7   : > { %s485_s30 = sshll.u32 %s1284_s18, 4  ;;  %s431_s14 = scalar_lea.sflag [#allocation6], %s1264_s29  ;;  %s486_s30 = int_to_ptr.vmem [resolvable:$true] %s485_s30 }
  0xb8   : > { %s909_s9 = scalar_lea.vmem %s1362_s28, 128  ;;  %s1068_s22 = smov [#allocation9]  }
  0xb9   : > { %p910_p12 = scmp.ne.s32.totalorder %s1362_s28, %s909_s9  ;;  %s913_s7 = sshll.u32 %s1068_s22, 4  ;;  %s914_s7 = int_to_ptr.vmem [resolvable:$false] %s913_s7 }
  0xba   : > { %s915_s20 = scalar_lea.vmem %s914_s7, 256  ;;  %p916_p10 = scmp.lt.s32.totalorder %s1362_s28, %s914_s7 }
  0xbb   : > { %p911_p9 = pnand %p910_p12, %p1482_p5  ;;  %p917_p1 = scmp.lt.s32.totalorder %s915_s20, %s909_s9 }
  0xbd   : > { %p912_p4 = pneg %p911_p9  ;;  %p918_p3 = por %p917_p1, %p916_p10 }
  0xbf   : > { %p919_p13 = pnand %p918_p3, %p912_p4 }
  0xc1   : > { %922 = shalt.err (!%p919_p13)
}
  0xc2   : > { %s923_s16 = scalar_lea.hbm %s1329_s17, 128  ;;  %s927_s15 = scalar_lea.hbm %s1460_s3, 256 }
  0xc3   : > { %p924_p2 = scmp.ne.s32.totalorder %s1329_s17, %s923_s16  ;;  %p928_p11 = scmp.lt.u32.totalorder %s1329_s17, %s1460_s3 }
  0xc4   : > { %p929_p6 = scmp.lt.u32.totalorder %s927_s15, %s923_s16  ;;  %p931_p12 = scmp.lt.u32.totalorder %s923_s16, %s1329_s17 }
  0xc5   : > { %p925_p8 = pnand %p924_p2, %p1482_p5 }
  0xc6   : > { %p930_p7 = por %p929_p6, %p928_p11 }
  0xc7   : > { %p926_p0 = pneg %p925_p8 }
  0xc8   : > { %p932_p9 = por %p931_p12, %p930_p7 }
  0xca   : > { %p933_p4 = pnand %p932_p9, %p926_p0 }
  0xcc   : > { %936 = shalt.err (!%p933_p4)
}
  0xcd   : > { %731 = dma.vmem_to_hbm [thread:$0]  (%p1482_p5), %s1362_s28, 128, %s1329_s17, %s431_s14  }
  0xce   : > { %s937_s9 = scalar_lea.vmem %s486_s30, 128  ;;  %s1069_s7 = smov [#allocation12]  }
  0xcf   : > { %p938_p10 = scmp.ne.s32.totalorder %s486_s30, %s937_s9  ;;  %s941_s20 = sshll.u32 %s1069_s7, 4  ;;  %s942_s20 = int_to_ptr.vmem [resolvable:$false] %s941_s20 }
  0xd0   : > { %s943_s16 = scalar_lea.vmem %s942_s20, 256  ;;  %p944_p13 = scmp.lt.s32.totalorder %s486_s30, %s942_s20 }
  0xd1   : > { %p939_p1 = pnand %p938_p10, %p1482_p5  ;;  %p945_p2 = scmp.lt.s32.totalorder %s943_s16, %s937_s9 }
  0xd3   : > { %p940_p3 = pneg %p939_p1  ;;  %p946_p8 = por %p945_p2, %p944_p13 }
  0xd5   : > { %p947_p0 = pnand %p946_p8, %p940_p3 }
  0xd7   : > { %950 = shalt.err (!%p947_p0)
}
  0xd8   : > { %s951_s18 = scalar_lea.hbm %s1360_s8, 128  ;;  %s955_s14 = scalar_lea.hbm %s1462_s5, 256 }
  0xd9   : > { %p952_p11 = scmp.ne.s32.totalorder %s1360_s8, %s951_s18  ;;  %p956_p12 = scmp.lt.u32.totalorder %s1360_s8, %s1462_s5 }
  0xda   : > { %p957_p9 = scmp.lt.u32.totalorder %s955_s14, %s951_s18  ;;  %p959_p10 = scmp.lt.u32.totalorder %s951_s18, %s1360_s8 }
  0xdb   : > { %p953_p6 = pnand %p952_p11, %p1482_p5 }
  0xdc   : > { %p958_p4 = por %p957_p9, %p956_p12 }
  0xdd   : > { %p954_p7 = pneg %p953_p6 }
  0xde   : > { %p960_p1 = por %p959_p10, %p958_p4 }
  0xe0   : > { %p961_p3 = pnand %p960_p1, %p954_p7 }
  0xe2   : > { %964 = shalt.err (!%p961_p3)
}
  0xe3   : > { %733 = dma.vmem_to_hbm [thread:$0]  (%p1482_p5), %s486_s30, 128, %s1360_s8, %s1331_s26  }
  0xe4   : > { %s1411_s22 = scalar_lea.hbm %s1463_s6, %s1314_s19  ;;  %s498_s9 = sshll.u32 %s1287_s21, 4  ;;  %s499_s9 = int_to_ptr.vmem [resolvable:$true] %s498_s9 }
  0xe5   : > { %s446_s7 = scalar_lea.sflag [#allocation14], %s1264_s29  ;;  %s965_s20 = scalar_lea.vmem %s499_s9, 128 }
  0xe6   : > { %p966_p13 = scmp.ne.s32.totalorder %s499_s9, %s965_s20  ;;  %s1070_s16 = smov [#allocation13]  }
  0xe7   : > { %s969_s18 = sshll.u32 %s1070_s16, 4  ;;  %s970_s18 = int_to_ptr.vmem [resolvable:$false] %s969_s18 }
  0xe8   : > { %p967_p2 = pnand %p966_p13, %p1482_p5  ;;  %s971_s17 = scalar_lea.vmem %s970_s18, 256 }
  0xe9   : > { %p972_p0 = scmp.lt.s32.totalorder %s499_s9, %s970_s18  ;;  %p973_p11 = scmp.lt.s32.totalorder %s971_s17, %s965_s20 }
  0xea   : > { %p968_p8 = pneg %p967_p2 }
  0xeb   : > { %p974_p6 = por %p973_p11, %p972_p0 }
  0xed   : > { %p975_p7 = pnand %p974_p6, %p968_p8 }
  0xef   : > { %978 = shalt.err (!%p975_p7)
}
  0xf0   : > { %s979_s29 = scalar_lea.hbm %s1411_s22, 128  ;;  %s983_s26 = scalar_lea.hbm %s1463_s6, 256 }
  0xf1   : > { %p980_p12 = scmp.ne.s32.totalorder %s1411_s22, %s979_s29  ;;  %p984_p10 = scmp.lt.u32.totalorder %s1411_s22, %s1463_s6 }
  0xf2   : > { %p985_p1 = scmp.lt.u32.totalorder %s983_s26, %s979_s29  ;;  %p987_p13 = scmp.lt.u32.totalorder %s979_s29, %s1411_s22 }
  0xf3   : > { %p981_p9 = pnand %p980_p12, %p1482_p5 }
  0xf4   : > { %p986_p3 = por %p985_p1, %p984_p10 }
  0xf5   : > { %p982_p4 = pneg %p981_p9 }
  0xf6   : > { %p988_p2 = por %p987_p13, %p986_p3 }
  0xf8   : > { %p989_p8 = pnand %p988_p2, %p982_p4 }
  0xfa   : > { %992 = shalt.err (!%p989_p8)
}
  0xfb   : > { %734 = dma.vmem_to_hbm [thread:$0]  (%p1482_p5), %s499_s9, 128, %s1411_s22, %s446_s7  }
  0xfc PF: > { %s510_s28 = sand.u32 1, %s1039_s23   ;;  %p1483_p0 = scmp.ne.s32.totalorder %s1475_s13, 0 }
  0xfd   : > { %p1484_p11 = scmp.ge.s32.totalorder %s1059_s0, 2  ;;  %s511_s14 = scalar_lea.sflag [#allocation6], %s510_s28 }
  0xff   : > { %p747_p6 = pnand %p1484_p11, %p1483_p0 }
 0x101   : > { %1026 = dma.done.wait (!%p747_p6), %s511_s14, 128  }
 0x102   : > { %1028 = vsyncadd (!%p747_p6), %s511_s14, 4294967168  ;;  %s1485_s1 = sadd.s32 4294967294, %s1059_s0  }
 0x103   : > { %s519_s12 = sand.u32 1, %s1485_s1  }
 0x104   : > { %s520_s15 = scalar_lea.sflag [#allocation11], %s519_s12 }
 0x105   : > { %1030 = dma.done.wait (!%p747_p6), %s520_s15, 256  }
 0x106   : > { %1032 = vsyncadd (!%p747_p6), %s520_s15, 4294967040  ;;  %s538_s11 = scalar_lea.sflag [#allocation14], %s510_s28 }
 0x107   : > { %1034 = dma.done.wait (!%p747_p6), %s538_s11, 128  }
 0x108   : > { %1036 = vsyncadd (!%p747_p6), %s538_s11, 4294967168  ;;  %s33_s0 = sadd.s32 1, %s1059_s0   ;;  %s1486_s13 = sld [smem:[#allocation21_spill]] }
 0x109   : > { %p30_p5 = scmp.ge.s32.totalorder %s33_s0, 4   ;;  %s1487_s10 = sld [smem:[#allocation20_spill]] }
 0x10a   : > { %s1488_s23 = smov %s1043_s24  ;;  %s1489_s24 = smov %s1047_s25 }
 0x10b   : > { %s1491_s26 = smov %s1055_s27  ;;  %32 = sbr.rel (!%p30_p5) target bundleno = 15 (0xf), region = 149 }
 0x10e   : > { %s1490_s25 = smov %s1486_s13 }
 0x10f   : > { %s1492_s27 = smov %s1487_s10 }
 0x112   :  { %543 = vsyncpa [#allocation5], 1 }
 0x113   :  { %545 = vsyncpa [#allocation5 + $0x1], 1 }
 0x114   :  { %546 = vsyncpa [#allocation8], 1 }
 0x115   :  { %548 = vsyncpa [#allocation8 + $0x1], 1 }
 0x116   :  { %549 = vsyncpa [#allocation6], 1 }
 0x117   :  { %551 = vsyncpa [#allocation6 + $0x1], 1 }
 0x118   :  { %552 = vsyncpa [#allocation11], 1 }
 0x119   :  { %554 = vsyncpa [#allocation11 + $0x1], 1 }
 0x11a   :  { %555 = vsyncpa [#allocation14], 1 }
 0x11b   :  { %557 = vsyncpa [#allocation14 + $0x1], 1 }

</bundles_post_ra>
